<compile_context>
chip_gen: v7x
topology: tpu7x:2x2x1
jax: 0.10.0
libtpu: 0.0.40
codegen_flags: <defaults>
</compile_context>

<pallas_src>
import jax
import jax.numpy as jnp
from jax.experimental import pallas as pl
from jax.experimental.pallas import tpu as pltpu

SIGMA_LEN = 4      # the parameter always has 4 entries (per __init__)
V_NUM = 4          # number of task losses weighted in this demo (module arg v_num)


def _uncertainty_loss_kernel(inp_ref, sigma_ref, out_ref):
    # inp_ref:   (1, SIGMA_LEN) f32 VMEM — per-task losses, zero-padded past v_num
    # sigma_ref: (1, SIGMA_LEN) f32 VMEM — learnable sigma parameters
    # out_ref:   (1, 1) f32 VMEM         — combined scalar loss
    inp = inp_ref[...]
    sigma = sigma_ref[...]
    # Single fused per-lane expression: data term + regularizer term.
    #   lane_i = 0.5 * inp_i * exp(-sigma_i) + 0.01 * exp(0.5 * sigma_i)
    per_lane = 0.5 * inp * jnp.exp(-sigma) + 0.01 * jnp.exp(0.5 * sigma)
    # One cross-lane reduction, kept 2-D so the store is a plain full-tile store.
    out_ref[...] = jnp.sum(per_lane, axis=1, keepdims=True)


def _uncertainty_loss_pallas(inp_padded: jax.Array, sigma: jax.Array) -> jax.Array:
    """inp_padded: (SIGMA_LEN,) f32 (zeros beyond v_num); sigma: (SIGMA_LEN,) f32."""
    out = pl.pallas_call(
        _uncertainty_loss_kernel,
        out_shape=jax.ShapeDtypeStruct((1, 1), jnp.float32),
        # Whole-array VMEM residency; no grid, no blocking, no pipelining.
        in_specs=[
            pl.BlockSpec(memory_space=pltpu.MemorySpace.VMEM),
            pl.BlockSpec(memory_space=pltpu.MemorySpace.VMEM),
        ],
        out_specs=pl.BlockSpec(memory_space=pltpu.MemorySpace.VMEM),
        # Tell XLA this custom call is essentially free so it does not
        # serialize surrounding fusions around it.
        cost_estimate=pl.CostEstimate(flops=16, transcendentals=8, bytes_accessed=36),
    )(
        inp_padded.reshape(1, SIGMA_LEN).astype(jnp.float32),
        sigma.reshape(1, SIGMA_LEN).astype(jnp.float32),
    )
    return out[0, 0]


def _pad_to_sigma_len(inp: jax.Array) -> jax.Array:
    v = inp.shape[0]
    if v == SIGMA_LEN:
        return inp.astype(jnp.float32)
    # Zero-padded lanes contribute 0 * exp(-sigma) = 0 to the data term,
    # exactly matching the PyTorch loop over i < v_num.
    return jnp.pad(inp.astype(jnp.float32), (0, SIGMA_LEN - v))


@jax.custom_vjp
def uncertainty_loss(inp: jax.Array, sigma: jax.Array) -> jax.Array:
    """Forward of UncertaintyLoss.

    inp: (v_num,) per-task losses (v_num <= 4); sigma: (4,) learnable params.
    Returns the scalar float32 combined loss.
    """
    return _uncertainty_loss_pallas(_pad_to_sigma_len(inp), sigma)


def _uncertainty_loss_fwd(inp, sigma):
    return uncertainty_loss(inp, sigma), (inp, sigma)


def _uncertainty_loss_bwd(residuals, g):
    # Closed-form backward in plain jnp (kept out of Pallas so it fuses with
    # the rest of the XLA backward graph and AD never enters the pallas_call).
    inp, sigma = residuals
    v = inp.shape[0]
    sigma_f32 = sigma.astype(jnp.float32)
    inp_p = _pad_to_sigma_len(inp)
    e_neg = jnp.exp(-sigma_f32)
    e_half = jnp.exp(0.5 * sigma_f32)
    d_inp = (g * 0.5 * e_neg[:v]).astype(inp.dtype)
    d_sigma = (g * (-0.5 * inp_p * e_neg + 0.005 * e_half)).astype(sigma.dtype)
    return d_inp, d_sigma


uncertainty_loss.defvjp(_uncertainty_loss_fwd, _uncertainty_loss_bwd)


def uncertainty_loss_ref(inp, sigma):
    # Pure-JAX reference mirroring the PyTorch forward.  In production, prefer
    # inlining THIS next to the producer of the per-task losses (XLA fuses it)
    # over launching the standalone Pallas kernel above.
    loss = 0.0
    for i in range(inp.shape[0]):
        loss = loss + inp[i] * 0.5 * jnp.exp(-sigma[i])
    loss = loss + 0.01 * jnp.sum(jnp.exp(0.5 * sigma))
    return loss


if __name__ == "__main__":
    # Deterministic parameter init, exactly as the module's __init__:
    #   sigma = -log(2 * [1, 0.5, 0.25, 0.125])
    sigma_init = jnp.array([1.0, 0.5, 0.25, 0.125], dtype=jnp.float32)
    sigma_param = -jnp.log(2.0 * sigma_init)                     # (4,)

    # Example per-task loss values (the `input[i]` scalars fed to forward()).
    key = jax.random.PRNGKey(0)
    task_losses = jax.random.uniform(key, (V_NUM,), dtype=jnp.float32) * 2.0

    # Forward via the Pallas kernel.
    loss = jax.jit(uncertainty_loss)(task_losses, sigma_param)
    loss = jax.block_until_ready(loss)

    ref = uncertainty_loss_ref(task_losses, sigma_param)
    assert jnp.allclose(loss, ref, rtol=1e-5, atol=1e-6), (loss, ref)

    # Gradient check: closed-form custom_vjp backward vs. autodiff of the ref.
    g_inp, g_sigma = jax.grad(uncertainty_loss, argnums=(0, 1))(task_losses, sigma_param)
    r_inp, r_sigma = jax.grad(uncertainty_loss_ref, argnums=(0, 1))(task_losses, sigma_param)
    assert jnp.allclose(g_inp, r_inp, rtol=1e-5, atol=1e-6), (g_inp, r_inp)
    assert jnp.allclose(g_sigma, r_sigma, rtol=1e-5, atol=1e-6), (g_sigma, r_sigma)

    # TODO(synk): the module's `self.count` increment and periodic
    # print(self.sigma) are host-side training-loop bookkeeping with no kernel
    # equivalent; they do not affect the returned loss value.
    print("KERNEL_OK")
</pallas_src>

<mosaic_0001>
module attributes {stable_mosaic.version = 11 : i64} {
  func.func @_uncertainty_loss_kernel(%arg0: memref<1x4xf32, #tpu.memory_space<vmem>>, %arg1: memref<1x4xf32, #tpu.memory_space<vmem>>, %arg2: memref<1x1xf32, #tpu.memory_space<vmem>>) attributes {dimension_semantics = [], scalar_prefetch = 0 : i64, scratch_operands = 0 : i64, tpu.core_type = #tpu.core_type<tc>} {
    %c0 = arith.constant 0 : index
    %c0_0 = arith.constant 0 : index
    %0 = vector.load %arg0[%c0, %c0_0] : memref<1x4xf32, #tpu.memory_space<vmem>>, vector<1x4xf32>
    %c0_1 = arith.constant 0 : index
    %c0_2 = arith.constant 0 : index
    %1 = vector.load %arg1[%c0_1, %c0_2] : memref<1x4xf32, #tpu.memory_space<vmem>>, vector<1x4xf32>
    %cst = arith.constant 5.000000e-01 : f32
    %2 = vector.broadcast %cst : f32 to vector<1x4xf32>
    %3 = arith.mulf %2, %0 : vector<1x4xf32>
    %cst_3 = arith.constant 0.000000e+00 : f32
    %4 = vector.broadcast %cst_3 : f32 to vector<1x4xf32>
    %5 = arith.subf %4, %1 : vector<1x4xf32>
    %6 = math.exp %5 : vector<1x4xf32>
    %7 = arith.mulf %3, %6 : vector<1x4xf32>
    %cst_4 = arith.constant 5.000000e-01 : f32
    %8 = vector.broadcast %cst_4 : f32 to vector<1x4xf32>
    %9 = arith.mulf %8, %1 : vector<1x4xf32>
    %10 = math.exp %9 : vector<1x4xf32>
    %cst_5 = arith.constant 0.00999999977 : f32
    %11 = vector.broadcast %cst_5 : f32 to vector<1x4xf32>
    %12 = arith.mulf %11, %10 : vector<1x4xf32>
    %13 = arith.addf %7, %12 : vector<1x4xf32>
    %cst_6 = arith.constant dense<0.000000e+00> : vector<1xf32>
    %14 = vector.multi_reduction <add>, %13, %cst_6 [1] : vector<1x4xf32> to vector<1xf32>
    %15 = vector.shape_cast %14 : vector<1xf32> to vector<1x1xf32>
    %c0_7 = arith.constant 0 : index
    %c0_8 = arith.constant 0 : index
    %16 = vector.load %arg2[%c0_7, %c0_8] : memref<1x1xf32, #tpu.memory_space<vmem>>, vector<1x1xf32>
    tpu.vector_store %arg2[%c0_7, %c0_8], %15 {strides = array<i32>} : memref<1x1xf32, #tpu.memory_space<vmem>>, vector<1x1xf32>,
    return
  }
}

</mosaic_0001>

<bundles_post_ra>
// kernel: uncertainty_loss.1
= control target key start
LH: loop header
LB: loop body
LE: loop exit
PB: predicated region body
PF: predicated region fallthrough
CT: control target
= control target key end

     0   :  { %s107_s0 = inlined_call_operand.vmem [shape: f32[1,4], index: 0, kind: input, shape index: {}]   ;;  %s108_s1 = inlined_call_operand.vmem [shape: f32[1,4], index: 1, kind: input, shape index: {}]   ;;  %s109_s2 = inlined_call_operand.hbm [shape: f32[1,1], index: 2, kind: output, shape index: {}]  }
   0x1   :  { %v13_v0 = vld [vmem:[%s108_s1] sm:$0x1] }
   0x2   :  { %v15_v1 = vsub.f32 0.0, %v13_v0  ;;  %v19_v2 = vmul.f32 0.5, %v13_v0 }
   0x3   :  { %7 = vsyncpa [#allocation3], 0  ;;  %v12_v5 = vld [vmem:[%s107_s0] sm:$0x1]  ;;  %vm24_vm0 = vcmask 24576   ;;  %s73_s1 = smov [#allocation2]  }
   0x4   :  { %v16_v3 = vmul.f32 1.442695, %v15_v1  ;;  %v20_v4 = vmul.f32 1.442695, %v19_v2  ;;  %v14_v6 = vmul.f32 0.5, %v12_v5  ;;  %s36_s13 = sshll.u32 %s73_s1, 4  ;;  %s37_s13 = int_to_ptr.vmem [resolvable:$true] %s36_s13 }
   0x5   :  { %vm28_vm1 = vcmask 0   ;;  %s49_s14 = scalar_lea.vmem %s37_s13, 16  ;;  %s53_s15 = scalar_lea.vmem %s37_s13, 32 }
   0x6   :  { %45 = vpow2.f32 %v16_v3  ;;  %p50_p0 = scmp.ne.s32.totalorder %s37_s13, %s49_s14  ;;  %p54_p1 = scmp.lt.s32.totalorder %s37_s13, %s37_s13 }
   0x7   :  { %47 = vpow2.f32 %v20_v4  ;;  %p55_p2 = scmp.lt.s32.totalorder %s53_s15, %s49_s14 }
   0x9   :  { %p56_p3 = por %p55_p2, %p54_p1 }
   0xb   :  { %p57_p4 = pnand %p56_p3, %p50_p0 }
  0x10   :  { %v46_v7 = vpop.eup %45 }
  0x11   :  { %v48_v8 = vpop.eup %47  ;;  %v18_v9 = vmul.f32 %v46_v7, %v14_v6 }
  0x12   :  { %v22_v10 = vmul.f32 0.01, %v48_v8 }
  0x14   :  { %v23_v11 = vadd.f32 %v22_v10, %v18_v9 }
  0x16   :  { %v25_v12 = vsel %vm24_vm0, %v23_v11, 0.0 }
  0x17   :  { %26 = vadd.xlane.f32.xlu0 %v25_v12 }
  0xa4   :  { %v27_v13 = vpop.xlane.xlu0 %26 }
  0xa5   :  { %29 = vst.msk [vmem:[#allocation2] sm:$0x1] %vm28_vm1, %v27_v13 }
  0xa6   :  { %60 = shalt.err (!%p57_p4)
}
  0xa7   :  { %s61_s17 = scalar_lea.hbm %s109_s2, 16 }
  0xa8   :  { %p62_p5 = scmp.ne.s32.totalorder %s109_s2, %s61_s17  ;;  %p65_p6 = scmp.lt.u32.totalorder %s61_s17, %s109_s2 }
  0xaa   :  { %p67_p7 = pnand %p65_p6, %p62_p5 }
  0xac   :  { %70 = shalt.err (!%p67_p7)
}
  0xad   :  { %39 = dma.vmem_to_hbm [thread:$0]  %s37_s13, 16, %s109_s2, [#allocation3]  }
  0xae   :  { %71 = dma.done.wait [#allocation3], 16  }
  0xaf   :  { %72 = vsyncadd [#allocation3], 4294967280 }
  0xb0   :  { %43 = vsyncpa [#allocation3], 1 }

</bundles_post_ra>
